<compile_context>
chip_gen: v7x
topology: tpu7x:2x2x1
jax: 0.10.0
libtpu: 0.0.40
codegen_flags: <defaults>
</compile_context>

<pallas_src>
import functools

import jax
import jax.numpy as jnp
from jax.experimental import pallas as pl
from jax.experimental.pallas import tpu as pltpu

EPS = 1e-5                    # nn.BatchNorm2d default eps
_FUSED_LANE_LIMIT = 4096      # N*S at or below this -> single fused kernel


def _shift_lanes(x2d, s):
    """out[:, i] = x2d[:, i + s], zero-filled outside [0, lanes). `s` is static."""
    c, _ = x2d.shape
    if s == 0:
        return x2d
    if s > 0:
        return jnp.concatenate([x2d[:, s:], jnp.zeros((c, s), x2d.dtype)], axis=1)
    return jnp.concatenate([jnp.zeros((c, -s), x2d.dtype), x2d[:, :s]], axis=1)


def _conv_block_body(x_ref, w1_ref, w2_ref, *, nb, k, pad, h, w, cin, cin_pad):
    """ReLU + (k,1) conv + (1,k) conv for the nb images in x_ref.

    x_ref : (nb, cin, S)        f32, S = H*W flattened on the lane axis
    w1_ref: (cin_pad, k*cin_pad) bf16, columns ordered [tap, in-channel]
    w2_ref: (cout,    k*cin_pad) bf16, columns ordered [tap, in-channel]
    Returns the second conv's output, shape (cout, nb*S), f32.
    """
    s = h * w

    # ReLU; zero-pad channels to cin_pad so every im2col piece is 8-sublane aligned
    # (the extra rows multiply against zero weight columns -> free on the MXU).
    rx = []
    for b in range(nb):
        r = jnp.maximum(x_ref[b], 0.0)                                  # (cin, s)
        if cin_pad > cin:
            r = jnp.concatenate(
                [r, jnp.zeros((cin_pad - cin, s), r.dtype)], axis=0)    # (cin_pad, s)
        rx.append(r)

    # ---- vertical (k x 1) conv: ONE matmul, contraction K = k*cin_pad ----
    # Shifting a flattened image by (dk - pad)*W lanes is a vertical shift by
    # (dk - pad) rows; the per-image zero fill implements the (pad, 0) padding.
    # Images are concatenated along the lane axis so the whole block is one dot.
    a1 = jnp.concatenate(
        [jnp.concatenate(
            [_shift_lanes(rx[b], (dk - pad) * w) for b in range(nb)], axis=1)
         for dk in range(k)],
        axis=0)                                                         # (k*cin_pad, nb*s)
    y1 = jnp.dot(w1_ref[...], a1.astype(jnp.bfloat16),
                 preferred_element_type=jnp.float32)                    # (cin_pad, nb*s)

    # ---- horizontal (1 x k) conv: ONE matmul ----
    # Shifting the whole (nb*s)-lane block by (dk - pad) lanes is a horizontal shift
    # by (dk - pad) columns; taps whose source column falls outside [0, W) are
    # zeroed, which implements the (0, pad) padding and kills row/image wrap-around.
    lane = jax.lax.broadcasted_iota(jnp.int32, (1, nb * s), 1)
    if (w & (w - 1)) == 0:
        col = lane & (w - 1)          # column index (power-of-two W, pure VPU)
    else:
        col = lane % w                # TODO(synk): verify vector rem lowering for non-pow2 W
    pieces = []
    for dk in range(k):
        off = dk - pad
        valid = jnp.logical_and(col + off >= 0, col + off < w)          # (1, nb*s)
        pieces.append(jnp.where(valid, _shift_lanes(y1, off), 0.0))
    a2 = jnp.concatenate(pieces, axis=0)                                # (k*cin_pad, nb*s)
    return jnp.dot(w2_ref[...], a2.astype(jnp.bfloat16),
                   preferred_element_type=jnp.float32)                  # (cout, nb*s)


def _facconv_fused_kernel(x_ref, w1_ref, w2_ref, gamma_ref, beta_ref, out_ref,
                          *, n, k, pad, h, w, cin, cin_pad, eps):
    """Whole forward pass in one grid step: the conv output never leaves VMEM and
    the BatchNorm batch statistics are finalized in-kernel (two-pass variance)."""
    s = h * w
    y2 = _conv_block_body(x_ref, w1_ref, w2_ref, nb=n, k=k, pad=pad, h=h, w=w,
                          cin=cin, cin_pad=cin_pad)                     # (cout, n*s)

    inv_count = 1.0 / float(n * s)
    mean = jnp.sum(y2, axis=1, keepdims=True) * inv_count               # (cout, 1)
    centered = y2 - mean
    var = jnp.sum(centered * centered, axis=1, keepdims=True) * inv_count
    scale = gamma_ref[...] * jax.lax.rsqrt(var + eps)                   # (cout, 1)
    normed = centered * scale + beta_ref[...]                           # (cout, n*s)
    for b in range(n):
        out_ref[b] = normed[:, b * s:(b + 1) * s].astype(out_ref.dtype)


def _facconv_conv_kernel(x_ref, w1_ref, w2_ref, y_ref, stats_ref, *,
                         nb, k, pad, h, w, cin, cin_pad):
    """ReLU + both 1-D convs + partial BN stats for one nb-image batch block."""
    s = h * w
    y2 = _conv_block_body(x_ref, w1_ref, w2_ref, nb=nb, k=k, pad=pad, h=h, w=w,
                          cin=cin, cin_pad=cin_pad)                     # (cout, nb*s)
    for b in range(nb):
        y_ref[b] = y2[:, b * s:(b + 1) * s]
    s1 = jnp.sum(y2, axis=1, keepdims=True)                             # (cout, 1)
    s2 = jnp.sum(y2 * y2, axis=1, keepdims=True)                        # (cout, 1)
    # Lane width 2 -> masked store, negligible at this Cout (review #8).
    stats_ref[...] = jnp.concatenate([s1, s2], axis=1)[None]            # (1, cout, 2)


def _bn_apply_kernel(y_ref, scale_ref, shift_ref, out_ref):
    """Pure streaming FMA: scale/shift were finalized once in the XLA wrapper."""
    out_ref[...] = (y_ref[...] * scale_ref[...][None]
                    + shift_ref[...][None]).astype(out_ref.dtype)


def facconv(x_nchw, w1_oihw, w2_oihw, gamma=None, beta=None, *,
            kernel_length, stride=1, padding,
            batch_block=None, force_two_pass=False):
    """FacConv forward: ReLU -> Conv2d(Cin,Cin,(k,1)) -> Conv2d(Cin,Cout,(1,k)) -> BN."""
    assert stride == 1, "only stride=1 implemented"
    k, pad = kernel_length, padding
    assert k == 2 * pad + 1, "only 'same' padding (k == 2*pad + 1) implemented"

    n, cin, h, w = x_nchw.shape
    cout = w2_oihw.shape[0]
    s = h * w
    assert w1_oihw.shape == (cin, cin, k, 1)
    assert w2_oihw.shape == (cout, cin, 1, k)

    if gamma is None:   # affine=False -> identity affine
        gamma = jnp.ones((cout,), jnp.float32)
    if beta is None:
        beta = jnp.zeros((cout,), jnp.float32)
    gamma2 = gamma.reshape(cout, 1).astype(jnp.float32)
    beta2 = beta.reshape(cout, 1).astype(jnp.float32)

    # Sublane-align the im2col channel axis (review #6).
    cin_pad = max(8, ((cin + 7) // 8) * 8)

    # Flatten spatial onto the lane axis (free reshape, no transpose of x).
    x_flat = x_nchw.reshape(n, cin, s)

    # Weight matrices: columns ordered [tap dk, in-channel ci], zero-padded to cin_pad.
    # w1m also gets cin_pad output rows (extra rows zero) so the first conv's output
    # is already 8-sublane aligned for the second conv's im2col.
    w1m = jnp.zeros((cin_pad, k, cin_pad), jnp.float32)
    w1m = w1m.at[:cin, :, :cin].set(jnp.transpose(w1_oihw[:, :, :, 0], (0, 2, 1)))
    w1m = w1m.reshape(cin_pad, k * cin_pad).astype(jnp.bfloat16)
    w2m = jnp.zeros((cout, k, cin_pad), jnp.float32)
    w2m = w2m.at[:, :, :cin].set(jnp.transpose(w2_oihw[:, :, 0, :], (0, 2, 1)))
    w2m = w2m.reshape(cout, k * cin_pad).astype(jnp.bfloat16)

    # ---------------- fused fast path: whole batch in one grid step ----------------
    if not force_two_pass and n * s <= _FUSED_LANE_LIMIT:
        kern = functools.partial(_facconv_fused_kernel, n=n, k=k, pad=pad,
                                 h=h, w=w, cin=cin, cin_pad=cin_pad, eps=EPS)
        out_flat = pl.pallas_call(
            kern,
            grid=(1,),
            in_specs=[
                pl.BlockSpec((n, cin, s), lambda i: (0, 0, 0)),
                pl.BlockSpec((cin_pad, k * cin_pad), lambda i: (0, 0)),
                pl.BlockSpec((cout, k * cin_pad), lambda i: (0, 0)),
                pl.BlockSpec((cout, 1), lambda i: (0, 0)),
                pl.BlockSpec((cout, 1), lambda i: (0, 0)),
            ],
            out_specs=pl.BlockSpec((n, cout, s), lambda i: (0, 0, 0)),
            out_shape=jax.ShapeDtypeStruct((n, cout, s), jnp.float32),
            compiler_params=pltpu.CompilerParams(
                dimension_semantics=("arbitrary",)),
        )(x_flat, w1m, w2m, gamma2, beta2)
        return out_flat.reshape(n, cout, h, w)

    # ---------------- blocked two-kernel path (large batches) ----------------
    if batch_block is None:
        batch_block = max(1, _FUSED_LANE_LIMIT // s)     # ~Nb*S lanes per step
    nb = max(1, min(batch_block, n))
    n_blocks = -(-n // nb)                               # cdiv
    n_padded = n_blocks * nb
    if n_padded != n:
        # Zero images contribute exactly zero to the BN sums (ReLU -> conv of zeros
        # is zero), so padding the batch does not perturb the statistics as long as
        # the count below uses the true n.
        x_flat = jnp.concatenate(
            [x_flat, jnp.zeros((n_padded - n, cin, s), x_flat.dtype)], axis=0)

    conv_kern = functools.partial(_facconv_conv_kernel, nb=nb, k=k, pad=pad,
                                  h=h, w=w, cin=cin, cin_pad=cin_pad)
    # TODO(synk): store y as bf16 between the two kernels to halve the intermediate
    # HBM traffic (review #3b) once the accuracy budget allows it.
    y, stats = pl.pallas_call(
        conv_kern,
        grid=(n_blocks,),
        in_specs=[
            pl.BlockSpec((nb, cin, s), lambda i: (i, 0, 0)),
            pl.BlockSpec((cin_pad, k * cin_pad), lambda i: (0, 0)),
            pl.BlockSpec((cout, k * cin_pad), lambda i: (0, 0)),
        ],
        out_specs=[
            pl.BlockSpec((nb, cout, s), lambda i: (i, 0, 0)),
            pl.BlockSpec((1, cout, 2), lambda i: (i, 0, 0)),
        ],
        out_shape=[
            jax.ShapeDtypeStruct((n_padded, cout, s), jnp.float32),
            jax.ShapeDtypeStruct((n_blocks, cout, 2), jnp.float32),
        ],
        compiler_params=pltpu.CompilerParams(
            dimension_semantics=("parallel",),
            vmem_limit_bytes=32 * 1024 * 1024),
    )(x_flat, w1m, w2m)

    # BatchNorm finalize (tiny) happens ONCE here in XLA, not per grid step (review #2).
    count = float(n * s)
    st = jnp.sum(stats, axis=0)                                   # (cout, 2)
    mean = st[:, 0:1] / count                                     # (cout, 1)
    # TODO(synk): E[y^2]-mean^2 can cancel for |mean| >> std; clamp guards rsqrt.
    var = jnp.maximum(st[:, 1:2] / count - mean * mean, 0.0)
    scale = gamma2 * jax.lax.rsqrt(var + EPS)                     # (cout, 1)
    shift = beta2 - mean * scale                                  # (cout, 1)

    out_flat = pl.pallas_call(
        _bn_apply_kernel,
        grid=(n_blocks,),
        in_specs=[
            pl.BlockSpec((nb, cout, s), lambda i: (i, 0, 0)),
            pl.BlockSpec((cout, 1), lambda i: (0, 0)),
            pl.BlockSpec((cout, 1), lambda i: (0, 0)),
        ],
        out_specs=pl.BlockSpec((nb, cout, s), lambda i: (i, 0, 0)),
        out_shape=jax.ShapeDtypeStruct((n_padded, cout, s), jnp.float32),
        compiler_params=pltpu.CompilerParams(
            dimension_semantics=("parallel",)),
    )(y, scale, shift)

    return out_flat[:n].reshape(n, cout, h, w)


def _reference(x, w1, w2, gamma, beta, k, pad):
    """Pure-JAX reference.  Conv operands are cast to bf16 to mirror the MXU's
    native bf16 x bf16 -> f32 path; accumulation and BatchNorm stay in f32."""
    xr = jnp.maximum(x, 0.0)
    c1 = jax.lax.conv_general_dilated(
        xr.astype(jnp.bfloat16), w1.astype(jnp.bfloat16), (1, 1),
        ((pad, pad), (0, 0)),
        dimension_numbers=("NCHW", "OIHW", "NCHW"),
        preferred_element_type=jnp.float32)
    c2 = jax.lax.conv_general_dilated(
        c1.astype(jnp.bfloat16), w2.astype(jnp.bfloat16), (1, 1),
        ((0, 0), (pad, pad)),
        dimension_numbers=("NCHW", "OIHW", "NCHW"),
        preferred_element_type=jnp.float32)
    mean = jnp.mean(c2, axis=(0, 2, 3), keepdims=True)
    var = jnp.mean((c2 - mean) ** 2, axis=(0, 2, 3), keepdims=True)
    return (c2 - mean) * jax.lax.rsqrt(var + EPS) * gamma.reshape(1, -1, 1, 1) \
        + beta.reshape(1, -1, 1, 1)


if __name__ == "__main__":
    key = jax.random.PRNGKey(0)
    k1, k2, k3, k4, k5 = jax.random.split(key, 5)

    N, CIN, COUT, H, W = 2, 4, 8, 16, 16
    KL, STRIDE, PADDING = 5, 1, 2

    x = jax.random.normal(k1, (N, CIN, H, W), jnp.float32)
    w1 = 0.2 * jax.random.normal(k2, (CIN, CIN, KL, 1), jnp.float32)   # Conv2d (k,1) weight
    w2 = 0.2 * jax.random.normal(k3, (COUT, CIN, 1, KL), jnp.float32)  # Conv2d (1,k) weight
    gamma = 1.0 + 0.1 * jax.random.normal(k4, (COUT,), jnp.float32)    # BN weight
    beta = 0.1 * jax.random.normal(k5, (COUT,), jnp.float32)           # BN bias

    ref = _reference(x, w1, w2, gamma, beta, KL, PADDING)

    # Fused single-kernel path (the one taken at these sizes).
    out_fused = jax.block_until_ready(
        facconv(x, w1, w2, gamma, beta,
                kernel_length=KL, stride=STRIDE, padding=PADDING))
    assert out_fused.shape == (N, COUT, H, W) and out_fused.dtype == jnp.float32
    err_fused = float(jnp.max(jnp.abs(out_fused - ref)))
    assert err_fused < 2e-3, err_fused

    # Blocked two-kernel fallback path, forced with one image per block so the
    # grid, the partial-stats reduction and the streaming BN kernel are exercised.
    out_blocked = jax.block_until_ready(
        facconv(x, w1, w2, gamma, beta,
                kernel_length=KL, stride=STRIDE, padding=PADDING,
                force_two_pass=True, batch_block=1))
    assert out_blocked.shape == (N, COUT, H, W) and out_blocked.dtype == jnp.float32
    err_blocked = float(jnp.max(jnp.abs(out_blocked - ref)))
    assert err_blocked < 2e-3, err_blocked

    print("KERNEL_OK")
</pallas_src>

<mosaic_0001>
module attributes {stable_mosaic.version = 11 : i64} {
  func.func @_facconv_fused_kernel(%arg0: i32, %arg1: memref<2x4x256xf32, #tpu.memory_space<vmem>>, %arg2: memref<8x40xbf16, #tpu.memory_space<vmem>>, %arg3: memref<8x40xbf16, #tpu.memory_space<vmem>>, %arg4: memref<8x1xf32, #tpu.memory_space<vmem>>, %arg5: memref<8x1xf32, #tpu.memory_space<vmem>>, %arg6: memref<2x8x256xf32, #tpu.memory_space<vmem>>) attributes {dimension_semantics = [#tpu.dimension_semantics<arbitrary>], iteration_bounds = array<i64: 1>, scalar_prefetch = 0 : i64, scratch_operands = 0 : i64, tpu.core_type = #tpu.core_type<tc>, window_params = [{pipeline_mode = #tpu.pipeline_mode<synchronous>, transform_indices = @transform_0, window_bounds = array<i64: 2, 4, 256>}, {pipeline_mode = #tpu.pipeline_mode<synchronous>, transform_indices = @transform_1, window_bounds = array<i64: 8, 40>}, {pipeline_mode = #tpu.pipeline_mode<synchronous>, transform_indices = @transform_2, window_bounds = array<i64: 8, 40>}, {pipeline_mode = #tpu.pipeline_mode<synchronous>, transform_indices = @transform_3, window_bounds = array<i64: 8, 1>}, {pipeline_mode = #tpu.pipeline_mode<synchronous>, transform_indices = @transform_4, window_bounds = array<i64: 8, 1>}, {pipeline_mode = #tpu.pipeline_mode<synchronous>, transform_indices = @transform_5, window_bounds = array<i64: 2, 8, 256>}]} {
    %c0 = arith.constant 0 : index
    %c0_0 = arith.constant 0 : index
    %c0_1 = arith.constant 0 : index
    %0 = vector.load %arg1[%c0, %c0_0, %c0_1] : memref<2x4x256xf32, #tpu.memory_space<vmem>>, vector<1x4x256xf32>
    %1 = vector.shape_cast %0 : vector<1x4x256xf32> to vector<4x256xf32>
    %cst = arith.constant 0.000000e+00 : f32
    %2 = vector.broadcast %cst : f32 to vector<4x256xf32>
    %3 = arith.maximumf %1, %2 : vector<4x256xf32>
    %cst_2 = arith.constant 0.000000e+00 : f32
    %4 = vector.broadcast %cst_2 : f32 to vector<4x256xf32>
    %5 = tpu.concatenate %3, %4 in 0 : vector<4x256xf32>, vector<4x256xf32> -> vector<8x256xf32>
    %c1 = arith.constant 1 : index
    %c0_3 = arith.constant 0 : index
    %c0_4 = arith.constant 0 : index
    %6 = vector.load %arg1[%c1, %c0_3, %c0_4] : memref<2x4x256xf32, #tpu.memory_space<vmem>>, vector<1x4x256xf32>
    %7 = vector.shape_cast %6 : vector<1x4x256xf32> to vector<4x256xf32>
    %cst_5 = arith.constant 0.000000e+00 : f32
    %8 = vector.broadcast %cst_5 : f32 to vector<4x256xf32>
    %9 = arith.maximumf %7, %8 : vector<4x256xf32>
    %cst_6 = arith.constant 0.000000e+00 : f32
    %10 = vector.broadcast %cst_6 : f32 to vector<4x256xf32>
    %11 = tpu.concatenate %9, %10 in 0 : vector<4x256xf32>, vector<4x256xf32> -> vector<8x256xf32>
    %cst_7 = arith.constant 0.000000e+00 : f32
    %12 = vector.broadcast %cst_7 : f32 to vector<8x32xf32>
    %13 = vector.extract_strided_slice %5 {offsets = [0, 0], sizes = [8, 224], strides = [1, 1]} : vector<8x256xf32> to vector<8x224xf32>
    %14 = tpu.concatenate %12, %13 in 1 : vector<8x32xf32>, vector<8x224xf32> -> vector<8x256xf32>
    %cst_8 = arith.constant 0.000000e+00 : f32
    %15 = vector.broadcast %cst_8 : f32 to vector<8x32xf32>
    %16 = vector.extract_strided_slice %11 {offsets = [0, 0], sizes = [8, 224], strides = [1, 1]} : vector<8x256xf32> to vector<8x224xf32>
    %17 = tpu.concatenate %15, %16 in 1 : vector<8x32xf32>, vector<8x224xf32> -> vector<8x256xf32>
    %18 = tpu.concatenate %14, %17 in 1 : vector<8x256xf32>, vector<8x256xf32> -> vector<8x512xf32>
    %cst_9 = arith.constant 0.000000e+00 : f32
    %19 = vector.broadcast %cst_9 : f32 to vector<8x16xf32>
    %20 = vector.extract_strided_slice %5 {offsets = [0, 0], sizes = [8, 240], strides = [1, 1]} : vector<8x256xf32> to vector<8x240xf32>
    %21 = tpu.concatenate %19, %20 in 1 : vector<8x16xf32>, vector<8x240xf32> -> vector<8x256xf32>
    %cst_10 = arith.constant 0.000000e+00 : f32
    %22 = vector.broadcast %cst_10 : f32 to vector<8x16xf32>
    %23 = vector.extract_strided_slice %11 {offsets = [0, 0], sizes = [8, 240], strides = [1, 1]} : vector<8x256xf32> to vector<8x240xf32>
    %24 = tpu.concatenate %22, %23 in 1 : vector<8x16xf32>, vector<8x240xf32> -> vector<8x256xf32>
    %25 = tpu.concatenate %21, %24 in 1 : vector<8x256xf32>, vector<8x256xf32> -> vector<8x512xf32>
    %26 = tpu.concatenate %5, %11 in 1 : vector<8x256xf32>, vector<8x256xf32> -> vector<8x512xf32>
    %27 = vector.extract_strided_slice %5 {offsets = [0, 16], sizes = [8, 240], strides = [1, 1]} : vector<8x256xf32> to vector<8x240xf32>
    %cst_11 = arith.constant 0.000000e+00 : f32
    %28 = vector.broadcast %cst_11 : f32 to vector<8x16xf32>
    %29 = tpu.concatenate %27, %28 in 1 : vector<8x240xf32>, vector<8x16xf32> -> vector<8x256xf32>
    %30 = vector.extract_strided_slice %11 {offsets = [0, 16], sizes = [8, 240], strides = [1, 1]} : vector<8x256xf32> to vector<8x240xf32>
    %cst_12 = arith.constant 0.000000e+00 : f32
    %31 = vector.broadcast %cst_12 : f32 to vector<8x16xf32>
    %32 = tpu.concatenate %30, %31 in 1 : vector<8x240xf32>, vector<8x16xf32> -> vector<8x256xf32>
    %33 = tpu.concatenate %29, %32 in 1 : vector<8x256xf32>, vector<8x256xf32> -> vector<8x512xf32>
    %34 = vector.extract_strided_slice %5 {offsets = [0, 32], sizes = [8, 224], strides = [1, 1]} : vector<8x256xf32> to vector<8x224xf32>
    %cst_13 = arith.constant 0.000000e+00 : f32
    %35 = vector.broadcast %cst_13 : f32 to vector<8x32xf32>
    %36 = tpu.concatenate %34, %35 in 1 : vector<8x224xf32>, vector<8x32xf32> -> vector<8x256xf32>
    %37 = vector.extract_strided_slice %11 {offsets = [0, 32], sizes = [8, 224], strides = [1, 1]} : vector<8x256xf32> to vector<8x224xf32>
    %cst_14 = arith.constant 0.000000e+00 : f32
    %38 = vector.broadcast %cst_14 : f32 to vector<8x32xf32>
    %39 = tpu.concatenate %37, %38 in 1 : vector<8x224xf32>, vector<8x32xf32> -> vector<8x256xf32>
    %40 = tpu.concatenate %36, %39 in 1 : vector<8x256xf32>, vector<8x256xf32> -> vector<8x512xf32>
    %41 = tpu.concatenate %18, %25, %26, %33, %40 in 0 : vector<8x512xf32>, vector<8x512xf32>, vector<8x512xf32>, vector<8x512xf32>, vector<8x512xf32> -> vector<40x512xf32>
    %c0_15 = arith.constant 0 : index
    %c0_16 = arith.constant 0 : index
    %42 = vector.load %arg2[%c0_15, %c0_16] : memref<8x40xbf16, #tpu.memory_space<vmem>>, vector<8x40xbf16>
    %43 = arith.truncf %41 : vector<40x512xf32> to vector<40x512xbf16>
    %cst_17 = arith.constant dense<0.000000e+00> : vector<8x512xf32>
    %44 = tpu.matmul %42, %43, %cst_17 {dimension_numbers = #tpu.dot_dimension_numbers<[1], [0], [0], [1], [0, 0, 1, 1], [], []>} : vector<8x40xbf16>, vector<40x512xbf16>, vector<8x512xf32> -> vector<8x512xf32>
    %45 = tpu.iota {dimensions = array<i32: 1>} : vector<1x512xi32>
    %c15_i32 = arith.constant 15 : i32
    %46 = vector.broadcast %c15_i32 : i32 to vector<1x512xi32>
    %47 = arith.andi %45, %46 : vector<1x512xi32>
    %c-2_i32 = arith.constant -2 : i32
    %48 = vector.broadcast %c-2_i32 : i32 to vector<1x512xi32>
    %49 = arith.addi %47, %48 : vector<1x512xi32>
    %c0_i32 = arith.constant 0 : i32
    %50 = vector.broadcast %c0_i32 : i32 to vector<1x512xi32>
    %51 = arith.cmpi sge, %49, %50 : vector<1x512xi32>
    %c-2_i32_18 = arith.constant -2 : i32
    %52 = vector.broadcast %c-2_i32_18 : i32 to vector<1x512xi32>
    %53 = arith.addi %47, %52 : vector<1x512xi32>
    %c16_i32 = arith.constant 16 : i32
    %54 = vector.broadcast %c16_i32 : i32 to vector<1x512xi32>
    %55 = arith.cmpi slt, %53, %54 : vector<1x512xi32>
    %56 = arith.andi %51, %55 : vector<1x512xi1>
    %cst_19 = arith.constant 0.000000e+00 : f32
    %57 = vector.broadcast %cst_19 : f32 to vector<8x2xf32>
    %58 = vector.extract_strided_slice %44 {offsets = [0, 0], sizes = [8, 510], strides = [1, 1]} : vector<8x512xf32> to vector<8x510xf32>
    %59 = tpu.concatenate %57, %58 in 1 : vector<8x2xf32>, vector<8x510xf32> -> vector<8x512xf32>
    %cst_20 = arith.constant 0.000000e+00 : f32
    %60 = vector.shape_cast %56 : vector<1x512xi1> to vector<1x512xi1>
    %61 = vector.broadcast %60 : vector<1x512xi1> to vector<8x512xi1>
    %62 = vector.broadcast %cst_20 : f32 to vector<8x512xf32>
    %63 = arith.select %61, %59, %62 : vector<8x512xi1>, vector<8x512xf32>
    %c-1_i32 = arith.constant -1 : i32
    %64 = vector.broadcast %c-1_i32 : i32 to vector<1x512xi32>
    %65 = arith.addi %47, %64 : vector<1x512xi32>
    %c0_i32_21 = arith.constant 0 : i32
    %66 = vector.broadcast %c0_i32_21 : i32 to vector<1x512xi32>
    %67 = arith.cmpi sge, %65, %66 : vector<1x512xi32>
    %c-1_i32_22 = arith.constant -1 : i32
    %68 = vector.broadcast %c-1_i32_22 : i32 to vector<1x512xi32>
    %69 = arith.addi %47, %68 : vector<1x512xi32>
    %c16_i32_23 = arith.constant 16 : i32
    %70 = vector.broadcast %c16_i32_23 : i32 to vector<1x512xi32>
    %71 = arith.cmpi slt, %69, %70 : vector<1x512xi32>
    %72 = arith.andi %67, %71 : vector<1x512xi1>
    %cst_24 = arith.constant 0.000000e+00 : f32
    %73 = vector.broadcast %cst_24 : f32 to vector<8x1xf32>
    %74 = vector.extract_strided_slice %44 {offsets = [0, 0], sizes = [8, 511], strides = [1, 1]} : vector<8x512xf32> to vector<8x511xf32>
    %75 = tpu.concatenate %73, %74 in 1 : vector<8x1xf32>, vector<8x511xf32> -> vector<8x512xf32>
    %cst_25 = arith.constant 0.000000e+00 : f32
    %76 = vector.shape_cast %72 : vector<1x512xi1> to vector<1x512xi1>
    %77 = vector.broadcast %76 : vector<1x512xi1> to vector<8x512xi1>
    %78 = vector.broadcast %cst_25 : f32 to vector<8x512xf32>
    %79 = arith.select %77, %75, %78 : vector<8x512xi1>, vector<8x512xf32>
    %c0_i32_26 = arith.constant 0 : i32
    %80 = vector.broadcast %c0_i32_26 : i32 to vector<1x512xi32>
    %81 = arith.addi %47, %80 : vector<1x512xi32>
    %c0_i32_27 = arith.constant 0 : i32
    %82 = vector.broadcast %c0_i32_27 : i32 to vector<1x512xi32>
    %83 = arith.cmpi sge, %81, %82 : vector<1x512xi32>
    %c0_i32_28 = arith.constant 0 : i32
    %84 = vector.broadcast %c0_i32_28 : i32 to vector<1x512xi32>
    %85 = arith.addi %47, %84 : vector<1x512xi32>
    %c16_i32_29 = arith.constant 16 : i32
    %86 = vector.broadcast %c16_i32_29 : i32 to vector<1x512xi32>
    %87 = arith.cmpi slt, %85, %86 : vector<1x512xi32>
    %88 = arith.andi %83, %87 : vector<1x512xi1>
    %cst_30 = arith.constant 0.000000e+00 : f32
    %89 = vector.shape_cast %88 : vector<1x512xi1> to vector<1x512xi1>
    %90 = vector.broadcast %89 : vector<1x512xi1> to vector<8x512xi1>
    %91 = vector.broadcast %cst_30 : f32 to vector<8x512xf32>
    %92 = arith.select %90, %44, %91 : vector<8x512xi1>, vector<8x512xf32>
    %c1_i32 = arith.constant 1 : i32
    %93 = vector.broadcast %c1_i32 : i32 to vector<1x512xi32>
    %94 = arith.addi %47, %93 : vector<1x512xi32>
    %c0_i32_31 = arith.constant 0 : i32
    %95 = vector.broadcast %c0_i32_31 : i32 to vector<1x512xi32>
    %96 = arith.cmpi sge, %94, %95 : vector<1x512xi32>
    %c1_i32_32 = arith.constant 1 : i32
    %97 = vector.broadcast %c1_i32_32 : i32 to vector<1x512xi32>
    %98 = arith.addi %47, %97 : vector<1x512xi32>
    %c16_i32_33 = arith.constant 16 : i32
    %99 = vector.broadcast %c16_i32_33 : i32 to vector<1x512xi32>
    %100 = arith.cmpi slt, %98, %99 : vector<1x512xi32>
    %101 = arith.andi %96, %100 : vector<1x512xi1>
    %102 = vector.extract_strided_slice %44 {offsets = [0, 1], sizes = [8, 511], strides = [1, 1]} : vector<8x512xf32> to vector<8x511xf32>
    %cst_34 = arith.constant 0.000000e+00 : f32
    %103 = vector.broadcast %cst_34 : f32 to vector<8x1xf32>
    %104 = tpu.concatenate %102, %103 in 1 : vector<8x511xf32>, vector<8x1xf32> -> vector<8x512xf32>
    %cst_35 = arith.constant 0.000000e+00 : f32
    %105 = vector.shape_cast %101 : vector<1x512xi1> to vector<1x512xi1>
    %106 = vector.broadcast %105 : vector<1x512xi1> to vector<8x512xi1>
    %107 = vector.broadcast %cst_35 : f32 to vector<8x512xf32>
    %108 = arith.select %106, %104, %107 : vector<8x512xi1>, vector<8x512xf32>
    %c2_i32 = arith.constant 2 : i32
    %109 = vector.broadcast %c2_i32 : i32 to vector<1x512xi32>
    %110 = arith.addi %47, %109 : vector<1x512xi32>
    %c0_i32_36 = arith.constant 0 : i32
    %111 = vector.broadcast %c0_i32_36 : i32 to vector<1x512xi32>
    %112 = arith.cmpi sge, %110, %111 : vector<1x512xi32>
    %c2_i32_37 = arith.constant 2 : i32
    %113 = vector.broadcast %c2_i32_37 : i32 to vector<1x512xi32>
    %114 = arith.addi %47, %113 : vector<1x512xi32>
    %c16_i32_38 = arith.constant 16 : i32
    %115 = vector.broadcast %c16_i32_38 : i32 to vector<1x512xi32>
    %116 = arith.cmpi slt, %114, %115 : vector<1x512xi32>
    %117 = arith.andi %112, %116 : vector<1x512xi1>
    %118 = vector.extract_strided_slice %44 {offsets = [0, 2], sizes = [8, 510], strides = [1, 1]} : vector<8x512xf32> to vector<8x510xf32>
    %cst_39 = arith.constant 0.000000e+00 : f32
    %119 = vector.broadcast %cst_39 : f32 to vector<8x2xf32>
    %120 = tpu.concatenate %118, %119 in 1 : vector<8x510xf32>, vector<8x2xf32> -> vector<8x512xf32>
    %cst_40 = arith.constant 0.000000e+00 : f32
    %121 = vector.shape_cast %117 : vector<1x512xi1> to vector<1x512xi1>
    %122 = vector.broadcast %121 : vector<1x512xi1> to vector<8x512xi1>
    %123 = vector.broadcast %cst_40 : f32 to vector<8x512xf32>
    %124 = arith.select %122, %120, %123 : vector<8x512xi1>, vector<8x512xf32>
    %125 = tpu.concatenate %63, %79, %92, %108, %124 in 0 : vector<8x512xf32>, vector<8x512xf32>, vector<8x512xf32>, vector<8x512xf32>, vector<8x512xf32> -> vector<40x512xf32>
    %c0_41 = arith.constant 0 : index
    %c0_42 = arith.constant 0 : index
    %126 = vector.load %arg3[%c0_41, %c0_42] : memref<8x40xbf16, #tpu.memory_space<vmem>>, vector<8x40xbf16>
    %127 = arith.truncf %125 : vector<40x512xf32> to vector<40x512xbf16>
    %cst_43 = arith.constant dense<0.000000e+00> : vector<8x512xf32>
    %128 = tpu.matmul %126, %127, %cst_43 {dimension_numbers = #tpu.dot_dimension_numbers<[1], [0], [0], [1], [0, 0, 1, 1], [], []>} : vector<8x40xbf16>, vector<40x512xbf16>, vector<8x512xf32> -> vector<8x512xf32>
    %cst_44 = arith.constant dense<0.000000e+00> : vector<8xf32>
    %129 = vector.multi_reduction <add>, %128, %cst_44 [1] : vector<8x512xf32> to vector<8xf32>
    %130 = vector.shape_cast %129 : vector<8xf32> to vector<8x1xf32>
    %cst_45 = arith.constant 0.001953125 : f32
    %131 = vector.broadcast %cst_45 : f32 to vector<8x1xf32>
    %132 = arith.mulf %130, %131 : vector<8x1xf32>
    %133 = vector.broadcast %132 : vector<8x1xf32> to vector<8x512xf32>
    %134 = arith.subf %128, %133 : vector<8x512xf32>
    %135 = arith.mulf %134, %134 : vector<8x512xf32>
    %cst_46 = arith.constant dense<0.000000e+00> : vector<8xf32>
    %136 = vector.multi_reduction <add>, %135, %cst_46 [1] : vector<8x512xf32> to vector<8xf32>
    %137 = vector.shape_cast %136 : vector<8xf32> to vector<8x1xf32>
    %cst_47 = arith.constant 0.001953125 : f32
    %138 = vector.broadcast %cst_47 : f32 to vector<8x1xf32>
    %139 = arith.mulf %137, %138 : vector<8x1xf32>
    %c0_48 = arith.constant 0 : index
    %c0_49 = arith.constant 0 : index
    %140 = vector.load %arg4[%c0_48, %c0_49] : memref<8x1xf32, #tpu.memory_space<vmem>>, vector<8x1xf32>
    %cst_50 = arith.constant 9.99999974E-6 : f32
    %141 = vector.broadcast %cst_50 : f32 to vector<8x1xf32>
    %142 = arith.addf %139, %141 : vector<8x1xf32>
    %143 = math.rsqrt %142 : vector<8x1xf32>
    %144 = arith.mulf %140, %143 : vector<8x1xf32>
    %145 = vector.broadcast %144 : vector<8x1xf32> to vector<8x512xf32>
    %146 = arith.mulf %134, %145 : vector<8x512xf32>
    %c0_51 = arith.constant 0 : index
    %c0_52 = arith.constant 0 : index
    %147 = vector.load %arg5[%c0_51, %c0_52] : memref<8x1xf32, #tpu.memory_space<vmem>>, vector<8x1xf32>
    %148 = vector.broadcast %147 : vector<8x1xf32> to vector<8x512xf32>
    %149 = arith.addf %146, %148 : vector<8x512xf32>
    %150 = vector.extract_strided_slice %149 {offsets = [0, 0], sizes = [8, 256], strides = [1, 1]} : vector<8x512xf32> to vector<8x256xf32>
    %c0_53 = arith.constant 0 : index
    %c0_54 = arith.constant 0 : index
    %c0_55 = arith.constant 0 : index
    %151 = vector.load %arg6[%c0_53, %c0_54, %c0_55] : memref<2x8x256xf32, #tpu.memory_space<vmem>>, vector<1x8x256xf32>
    %152 = vector.shape_cast %151 : vector<1x8x256xf32> to vector<8x256xf32>
    %153 = vector.shape_cast %150 : vector<8x256xf32> to vector<1x8x256xf32>
    tpu.vector_store %arg6[%c0_53, %c0_54, %c0_55], %153 {strides = array<i32>} : memref<2x8x256xf32, #tpu.memory_space<vmem>>, vector<1x8x256xf32>,
    %154 = vector.extract_strided_slice %149 {offsets = [0, 256], sizes = [8, 256], strides = [1, 1]} : vector<8x512xf32> to vector<8x256xf32>
    %c1_56 = arith.constant 1 : index
    %c0_57 = arith.constant 0 : index
    %c0_58 = arith.constant 0 : index
    %155 = vector.load %arg6[%c1_56, %c0_57, %c0_58] : memref<2x8x256xf32, #tpu.memory_space<vmem>>, vector<1x8x256xf32>
    %156 = vector.shape_cast %155 : vector<1x8x256xf32> to vector<8x256xf32>
    %157 = vector.shape_cast %154 : vector<8x256xf32> to vector<1x8x256xf32>
    tpu.vector_store %arg6[%c1_56, %c0_57, %c0_58], %157 {strides = array<i32>} : memref<2x8x256xf32, #tpu.memory_space<vmem>>, vector<1x8x256xf32>,
    return
  }
  func.func @transform_0(%arg0: i32) -> (i32, i32, i32) {
    %c0_i32 = arith.constant 0 : i32
    %c0_i32_0 = arith.constant 0 : i32
    %c0_i32_1 = arith.constant 0 : i32
    %c0_i32_2 = arith.constant 0 : i32
    return %c0_i32, %c0_i32_0, %c0_i32_1 : i32, i32, i32
  }
  func.func @transform_1(%arg0: i32) -> (i32, i32) {
    %c0_i32 = arith.constant 0 : i32
    %c0_i32_0 = arith.constant 0 : i32
    %c0_i32_1 = arith.constant 0 : i32
    return %c0_i32, %c0_i32_0 : i32, i32
  }
  func.func @transform_2(%arg0: i32) -> (i32, i32) {
    %c0_i32 = arith.constant 0 : i32
    %c0_i32_0 = arith.constant 0 : i32
    %c0_i32_1 = arith.constant 0 : i32
    return %c0_i32, %c0_i32_0 : i32, i32
  }
  func.func @transform_3(%arg0: i32) -> (i32, i32) {
    %c0_i32 = arith.constant 0 : i32
    %c0_i32_0 = arith.constant 0 : i32
    %c0_i32_1 = arith.constant 0 : i32
    return %c0_i32, %c0_i32_0 : i32, i32
  }
  func.func @transform_4(%arg0: i32) -> (i32, i32) {
    %c0_i32 = arith.constant 0 : i32
    %c0_i32_0 = arith.constant 0 : i32
    %c0_i32_1 = arith.constant 0 : i32
    return %c0_i32, %c0_i32_0 : i32, i32
  }
  func.func @transform_5(%arg0: i32) -> (i32, i32, i32) {
    %c0_i32 = arith.constant 0 : i32
    %c0_i32_0 = arith.constant 0 : i32
    %c0_i32_1 = arith.constant 0 : i32
    %c0_i32_2 = arith.constant 0 : i32
    return %c0_i32, %c0_i32_0, %c0_i32_1 : i32, i32, i32
  }
}

</mosaic_0001>

<bundles_post_ra>
// kernel: tpu_custom_call.1
= control target key start
LH: loop header
LB: loop body
LE: loop exit
PB: predicated region body
PF: predicated region fallthrough
CT: control target
= control target key end

     0   :  { %vm27_vm0 = vcmask 1043456   ;;  %s1019_s0 = inlined_call_operand.vmem [shape: f32[2,4,256], index: 0, kind: input, shape index: {}]   ;;  %s1020_s1 = inlined_call_operand.vmem [shape: bf16[8,40], index: 1, kind: input, shape index: {}]   ;;  %s1021_s2 = inlined_call_operand.vmem [shape: bf16[8,40], index: 2, kind: input, shape index: {}]   ;;  %s1022_s3 = inlined_call_operand.vmem [shape: f32[8,1], index: 3, kind: input, shape index: {}]   ;;  %s1023_s4 = inlined_call_operand.vmem [shape: f32[8,1], index: 4, kind: input, shape index: {}]   ;;  %s1024_s5 = inlined_call_operand.hbm [shape: f32[2,8,256], index: 5, kind: output, shape index: {}]  }
   0x1   :  { %v612_v0 = vld [vmem:[%s1019_s0 + $0x8] sm:$0xff]  ;;  %v22_v1 = vld [vmem:[%s1019_s0] sm:$0xff] }
   0x2   :  { %v830_v2 = vmax.f32 %v612_v0, 0.0  ;;  %v832_v3 = vmax.f32 %v22_v1, 0.0 }
   0x3   :  { %10 = vsyncpa [#allocation3], 0  ;;  %s782_s0 = smov 32   ;;  %s783_s22 = smov 16   ;;  %v784_v12 = vmov 0   ;;  %vm44_vm1 = vcmask 261120  }
   0x4   :  { %v34_v4 = vcombine.high %v830_v2, %v830_v2  ;;  %v36_v5 = vsel %vm27_vm0, %v830_v2, 0.0  ;;  %v25_v6 = vcombine.high %v832_v3, %v832_v3  ;;  %v28_v7 = vsel %vm27_vm0, %v832_v3, 0.0  ;;  %171 = vmatprep.mubr.bf16.mxu0 %v784_v12  ;;  %212 = vmatprep.mubr.bf16.mxu1 %v784_v12  ;;  %s785_s23 = smov 112   ;;  %s786_s24 = smov 96   ;;  %vm854_vm4 = vmneg %vm44_vm1  ;;  %v110_v1 = vld [vmem:[%s1020_s1] sm:$0xf] }
   0x5   :  { %754 = vset.pattern.permute.xlu0 %v784_v12  ;;  %755 = vset.pattern.permute.xlu1 %v784_v12  ;;  %vm63_vm2 = vcmask 130048   ;;  %vm80_vm5 = vcmask 916480   ;;  %vm97_vm8 = vcmask 785408   ;;  %vm787_vm9 = vmmov 1   ;;  %s788_s1 = smov 1   ;;  %s789_s27 = smov 2  }
   0x6   :  { %v37_v8 = vsel %vm27_vm0, %v34_v4, 0.0  ;;  %v29_v9 = vsel %vm27_vm0, %v25_v6, 0.0  ;;  %vm850_vm3 = vmneg %vm63_vm2  ;;  %vm1025_vm11 = vcmask 326656   ;;  %s790_s28 = smov 127   ;;  %s791_s29 = smov 126   ;;  %vm303_vm12 = vcmask 7168  }
   0x7   :  { %v689_v10 = vpack.i.bf16 %v37_v8, %v36_v5  ;;  %v679_v11 = vpack.i.bf16 %v29_v9, %v28_v7  ;;  %vm615_vm6 = vmpackc.low %vm850_vm3, %vm854_vm4  ;;  %vm258_vm13 = vcmask 15360   ;;  %vm372_vm3 = vcmask 1039360   ;;  %s792_s10 = smov [#allocation2]  }
   0x8   :  { %vm864_vm7 = vmpackc.low %vm80_vm5, %vm27_vm0  ;;  %s601_s11 = sshll.u32 %s792_s10, 4  ;;  %s602_s11 = int_to_ptr.vmem [resolvable:$true] %s601_s11 }
   0x9   :  { %690 = vrot.lane.b32.xlu1 %v689_v10, %s782_s0  ;;  %680 = vrot.lane.b32.xlu0 %v679_v11, %s782_s0  ;;  %vm872_vm10 = vmpackc.low %vm787_vm9, %vm27_vm0  ;;  %p763_p1 = scmp.lt.s32.totalorder %s602_s11, %s602_s11 }
   0xd   :  { %695 = vrot.lane.b32.xlu1 %v689_v10, %s783_s22  ;;  %685 = vrot.lane.b32.xlu0 %v679_v11, %s783_s22 }
  0x11   :  { %705 = vrot.lane.b32.xlu1 %v689_v10, %s785_s23  ;;  %700 = vrot.lane.b32.xlu0 %v679_v11, %s785_s23 }
  0x15   :  { %715 = vrot.lane.b32.xlu1 %v689_v10, %s786_s24  ;;  %710 = vrot.lane.b32.xlu0 %v679_v11, %s786_s24 }
  0x7b   :  { %v691_v13 = vpop.permute.xlu1 %690  ;;  %v681_v14 = vpop.permute.xlu0 %680 }
  0x7c   :  { %v693_v15 = vunpack.i.h.bf16 %v691_v13  ;;  %v692_v16 = vunpack.i.l.bf16 %v691_v13  ;;  %v683_v17 = vunpack.i.h.bf16 %v681_v14  ;;  %v682_v18 = vunpack.i.l.bf16 %v681_v14 }
  0x7d   :  { %v221_v14 = vlaneseq }
  0x7e   :  { %v55_v21 = vsel %vm44_vm1, %v692_v16, %v693_v15  ;;  %v45_v28 = vsel %vm44_vm1, %v682_v18, %v683_v17 }
  0x7f   :  { %v696_v19 = vpop.permute.xlu1 %695  ;;  %v686_v20 = vpop.permute.xlu0 %685  ;;  %v222_v15 = vand.u32 127, %v221_v14 }
  0x80   :  { %v698_v23 = vunpack.i.h.bf16 %v696_v19  ;;  %v697_v24 = vunpack.i.l.bf16 %v696_v19  ;;  %v688_v25 = vunpack.i.h.bf16 %v686_v20  ;;  %v687_v26 = vunpack.i.l.bf16 %v686_v20 }
  0x81   :  { %v225_v17 = vadd.s32 384, %v222_v15  ;;  %v226_v20 = vand.u32 15, %v222_v15 }
  0x82   :  { %v64_v29 = vsel %vm63_vm2, %v687_v26, %v688_v25  ;;  %v72_v30 = vsel %vm63_vm2, %v697_v24, %v698_v23  ;;  %v629_v31 = vpack.c.bf16 %v697_v24, %v692_v16  ;;  %v616_v32 = vpack.c.bf16 %v687_v26, %v682_v18 }
  0x83   :  { %v706_v33 = vpop.permute.xlu1 %705  ;;  %v701_v34 = vpop.permute.xlu0 %700  ;;  %v112_v35 = vpack.c.bf16 %v64_v29, %v45_v28  ;;  %v114_v36 = vpack.c.bf16 %v72_v30, %v55_v21  ;;  %v223_v16 = vadd.s32 128, %v222_v15  ;;  %v224_v18 = vadd.s32 256, %v222_v15 }
  0x84   :  { %v708_v37 = vunpack.i.h.bf16 %v706_v33  ;;  %v707_v38 = vunpack.i.l.bf16 %v706_v33  ;;  %v703_v39 = vunpack.i.h.bf16 %v701_v34  ;;  %v702_v40 = vunpack.i.l.bf16 %v701_v34 }
  0x85   :  { %139 = vmatprep.subr.bf16.mxu0 %v112_v35  ;;  %180 = vmatprep.subr.bf16.mxu1 %v114_v36  ;;  %v227_v19 = vand.u32 15, %v223_v16  ;;  %v919_v21 = vand.u32 15, %v225_v17  ;;  %v921_v22 = vand.u32 15, %v224_v18  ;;  %v230_v25 = vadd.s32 4294967294, %v226_v20 }
  0x86   :  { %v632_v42 = vpack.c.bf16 %v708_v37, %v34_v4  ;;  %v619_v43 = vpack.c.bf16 %v703_v39, %v25_v6  ;;  %617 = vmatpush1.bf16.msk.msra.mxu0 %vm615_vm6, %v616_v32  ;;  %630 = vmatpush1.bf16.msk.msra.mxu1 %vm615_vm6, %v629_v31  ;;  %v81_v44 = vsel %vm80_vm5, %v702_v40, %v703_v39  ;;  %v279_v26 = vadd.s32 4294967295, %v226_v20 }
  0x87   :  { %v716_v45 = vpop.permute.xlu1 %715  ;;  %v711_v46 = vpop.permute.xlu0 %710  ;;  %v89_v47 = vsel %vm80_vm5, %v707_v38, %v708_v37  ;;  %v622_v49 = vpack.c.bf16 %v81_v44, %v832_v3  ;;  %v231_v23 = vadd.s32 4294967294, %v227_v19  ;;  %v280_v24 = vadd.s32 4294967295, %v227_v19 }
  0x88   :  { %v718_v50 = vunpack.i.h.bf16 %v716_v45  ;;  %v717_v51 = vunpack.i.l.bf16 %v716_v45  ;;  %v713_v52 = vunpack.i.h.bf16 %v711_v46  ;;  %v712_v53 = vunpack.i.l.bf16 %v711_v46  ;;  %620 = vmatprep.subr.msk.bf16.mxu0 %vm864_vm7, %v619_v43  ;;  %633 = vmatprep.subr.msk.bf16.mxu1 %vm864_vm7, %v632_v42 }
  0x89   :  { %v635_v54 = vpack.c.bf16 %v89_v47, %v830_v2  ;;  %v233_v27 = vadd.s32 4294967294, %v919_v21  ;;  %v282_v28 = vadd.s32 4294967295, %v919_v21  ;;  %v232_v29 = vadd.s32 4294967294, %v921_v22 }
  0x8a   :  { %v109_v55 = vsel %vm97_vm8, %v718_v50, 0.0  ;;  %v101_v56 = vsel %vm97_vm8, %v713_v52, 0.0  ;;  %623 = vmatpush1.bf16.msk.msra.mxu0 %vm872_vm10, %v622_v49  ;;  %v98_v57 = vsel %vm97_vm8, %v712_v53, %v713_v52  ;;  %v106_v58 = vsel %vm97_vm8, %v717_v51, %v718_v50 }
  0x8b   :  { %v122_v59 = vpack.c.bf16 %v109_v55, %v109_v55  ;;  %v120_v60 = vpack.c.bf16 %v101_v56, %v101_v56  ;;  %636 = vmatpush1.bf16.msk.msra.mxu1 %vm872_vm10, %v635_v54  ;;  %v119_v61 = vpack.c.bf16 %v98_v57, %v98_v57  ;;  %v121_v62 = vpack.c.bf16 %v106_v58, %v106_v58 }
  0x8c   :  { %v281_v30 = vadd.s32 4294967295, %v921_v22  ;;  %vm235_vm14 = vcmp.ge.s32.totalorder %v231_v23, 0  ;;  %vm284_vm15 = vcmp.ge.s32.totalorder %v280_v24, 0  ;;  %vm234_vm1 = vcmp.ge.s32.totalorder %v230_v25, 0 }
  0x8d   :  { %624 = vmatprep.subr.msk.bf16.mxu0 %vm27_vm0, %v120_v60  ;;  %637 = vmatprep.subr.msk.bf16.mxu1 %vm27_vm0, %v122_v59  ;;  %v128_v63 = vsel %vm27_vm0, %v119_v61, 0  ;;  %v134_v0 = vsel %vm27_vm0, %v121_v62, 0  ;;  %vm283_vm2 = vcmp.ge.s32.totalorder %v279_v26, 0  ;;  %vm237_vm4 = vcmp.ge.s32.totalorder %v233_v27, 0  ;;  %vm639_vm8 = vmpackc.low %vm284_vm15, %vm235_vm14 }
  0x8e   :  { %144 = vmatpush1.bf16.msra.mxu0 %v128_v63  ;;  %vm286_vm5 = vcmp.ge.s32.totalorder %v282_v28, 0  ;;  %vm236_vm6 = vcmp.ge.s32.totalorder %v232_v29, 0  ;;  %vm285_vm7 = vcmp.ge.s32.totalorder %v281_v30, 0  ;;  %v349_v37 = vadd.s32 1, %v227_v19  ;;  %vm936_vm10 = vmpackc.low %vm283_vm2, %vm234_vm1 }
  0x8f   :  { %185 = vmatpush1.bf16.msra.mxu1 %v134_v0  ;;  %v351_v38 = vadd.s32 1, %v919_v21  ;;  %v348_v48 = vadd.s32 1, %v226_v20  ;;  %v350_v49 = vadd.s32 1, %v921_v22  ;;  %v394_v54 = vadd.s32 2, %v227_v19  ;;  %vm653_vm15 = vmpackc.low %vm286_vm5, %vm237_vm4 }
  0x90   :  { %v393_v55 = vadd.s32 2, %v226_v20  ;;  %vm951_vm1 = vmpackc.low %vm285_vm7, %vm236_vm6  ;;  %vm417_vm5 = vcmask 1031168  }
  0x91   :  { %625 = vmatmul.mubr.msk.bf16.vlgmr.msra.gmra.mrb[0].mxu0 %vm1025_vm11, %v110_v1  ;;  %vm359_vm14 = vcmp.lt.s32.totalorder %v351_v38, 16  ;;  %vm358_vm2 = vcmp.lt.s32.totalorder %v350_v49, 16 }
  0x92   :  { %638 = vmatmul.mubr.msk.bf16.vlgmr.msra.gmra.mrb[0].mxu1 %vm1025_vm11, %v110_v1  ;;  %498 = vmatprep.mubr.bf16.mxu0 %v784_v12  ;;  %vm357_vm11 = vcmp.lt.s32.totalorder %v349_v37, 16  ;;  %vm963_vm4 = vmpackc.low %vm359_vm14, %vm787_vm9  ;;  %vm401_vm7 = vcmp.lt.s32.totalorder %v393_v55, 16 }
  0x93   :  { %539 = vmatprep.mubr.bf16.mxu1 %v784_v12  ;;  %vm662_vm6 = vmpackc.low %vm358_vm2, %vm787_vm9 }
 0x164   :  { %v901_v2 = vpop.f32.mrb[0].mxu0 }
 0x165   :  { %v903_v3 = vpop.f32.mrb[0].mxu1  ;;  %v905_v4 = vpop.f32.mrb[1].mxu0 }
 0x166   :  { %v907_v5 = vpop.f32.mrb[1].mxu1  ;;  %v177_v6 = vpop.f32.mrb[2].mxu0  ;;  %v724_v7 = vpack.i.bf16 %v905_v4, %v901_v2  ;;  %v739_v8 = vpack.i.bf16 %v903_v3, %v905_v4 }
 0x167   :  { %v178_v9 = vpop.f32.mrb[3].mxu0  ;;  %v218_v10 = vpop.f32.mrb[2].mxu1  ;;  %v734_v11 = vpack.i.bf16 %v907_v5, %v903_v3  ;;  %v744_v12 = vpack.i.bf16 %v907_v5, %v901_v2 }
 0x168   :  { %v219_v13 = vpop.f32.mrb[3].mxu1  ;;  %725 = vrot.lane.b32.xlu1 %v724_v7, %s788_s1  ;;  %720 = vrot.lane.b32.xlu0 %v724_v7, %s789_s27 }
 0x16c   :  { %735 = vrot.lane.b32.xlu1 %v734_v11, %s788_s1  ;;  %730 = vrot.lane.b32.xlu0 %v734_v11, %s789_s27  ;;  %v395_v11 = vadd.s32 2, %v921_v22 }
 0x170   :  { %745 = vrot.lane.b32.xlu1 %v744_v12, %s790_s28  ;;  %740 = vrot.lane.b32.xlu0 %v739_v8, %s790_s28  ;;  %v396_v12 = vadd.s32 2, %v919_v21 }
 0x174   :  { %413 = vrot.lane.b32.xlu1 %v903_v3, %s791_s29  ;;  %750 = vrot.lane.b32.xlu0 %v724_v7, %s791_s29 }
 0x178   :  { %415 = vrot.lane.b32.xlu0 %v907_v5, %s791_s29 }
 0x1da   :  { %v726_v31 = vpop.permute.xlu1 %725  ;;  %v721_v32 = vpop.permute.xlu0 %720 }
 0x1db   :  { %v728_v33 = vunpack.i.h.bf16 %v726_v31  ;;  %v727_v34 = vunpack.i.l.bf16 %v726_v31  ;;  %v723_v35 = vunpack.i.h.bf16 %v721_v32  ;;  %v722_v36 = vunpack.i.l.bf16 %v721_v32 }
 0x1dd   :  { %v304_v39 = vsel %vm303_vm12, %v727_v34, %v728_v33  ;;  %v311_v40 = vsel %vm303_vm12, 0.0, %v727_v34  ;;  %v259_v41 = vsel %vm258_vm13, %v722_v36, %v723_v35  ;;  %v266_v42 = vsel %vm258_vm13, 0.0, %v722_v36 }
 0x1de   :  { %v640_v43 = vpack.c.bf16 %v304_v39, %v259_v41  ;;  %v643_v44 = vpack.c.bf16 %v311_v40, %v266_v42  ;;  %v736_v45 = vpop.permute.xlu1 %735  ;;  %v731_v46 = vpop.permute.xlu0 %730 }
 0x1df   :  { %v738_v50 = vunpack.i.h.bf16 %v736_v45  ;;  %v737_v51 = vunpack.i.l.bf16 %v736_v45  ;;  %v733_v52 = vunpack.i.h.bf16 %v731_v46  ;;  %v732_v53 = vunpack.i.l.bf16 %v731_v46 }
 0x1e0   :  { %641 = vmatprep.subr.msk.bf16.mxu0 %vm639_vm8, %v640_v43  ;;  %vm403_vm8 = vcmp.lt.s32.totalorder %v395_v11, 16 }
 0x1e1   :  { %v305_v56 = vsel %vm303_vm12, %v728_v33, %v737_v51  ;;  %v306_v57 = vsel %vm303_vm12, %v737_v51, %v738_v50  ;;  %v260_v58 = vsel %vm258_vm13, %v723_v35, %v732_v53  ;;  %v261_v59 = vsel %vm258_vm13, %v732_v53, %v733_v52  ;;  %644 = vmatpush1.bf16.msk.msra.mxu0 %vm936_vm10, %v643_v44  ;;  %vm957_vm13 = vmpackc.low %vm357_vm11, %vm787_vm9  ;;  %v438_v35 = vld [vmem:[%s1021_s2] sm:$0xf] }
 0x1e2   :  { %v654_v60 = vpack.c.bf16 %v306_v57, %v261_v59  ;;  %v657_v61 = vpack.c.bf16 %v305_v56, %v260_v58  ;;  %v746_v62 = vpop.permute.xlu1 %745  ;;  %v741_v63 = vpop.permute.xlu0 %740  ;;  %vm356_vm12 = vcmp.lt.s32.totalorder %v348_v48, 16  ;;  %vm404_vm10 = vcmp.lt.s32.totalorder %v396_v12, 16 }
 0x1e3   :  { %v748_v1 = vunpack.i.h.bf16 %v746_v62  ;;  %v747_v6 = vunpack.i.l.bf16 %v746_v62  ;;  %v743_v7 = vunpack.i.h.bf16 %v741_v63  ;;  %v742_v8 = vunpack.i.l.bf16 %v741_v63  ;;  %vm648_vm11 = vmpackc.low %vm356_vm12, %vm787_vm9 }
 0x1e4   :  { %655 = vmatprep.subr.msk.bf16.mxu1 %vm653_vm15, %v654_v60  ;;  %vm1042_vm9 = vcmask 326656  }
 0x1e5   :  { %v380_v13 = vsel %vm372_vm3, %v748_v1, 0.0  ;;  %v375_v14 = vsel %vm372_vm3, %v743_v7, %v748_v1  ;;  %v373_v15 = vsel %vm372_vm3, %v747_v6, %v742_v8  ;;  %v374_v16 = vsel %vm372_vm3, %v742_v8, %v743_v7  ;;  %658 = vmatpush1.bf16.msk.msra.mxu1 %vm951_vm1, %v657_v61  ;;  %vm1043_vm14 = vmmov %vm1042_vm9  ;;  %v581_v61 = vld [vmem:[%s1023_s4] sm:$0xff] }
 0x1e6   :  { %v660_v17 = vpack.c.bf16 %v380_v13, %v907_v5  ;;  %v663_v18 = vpack.c.bf16 %v375_v14, %v903_v3  ;;  %v646_v19 = vpack.c.bf16 %v374_v16, %v905_v4  ;;  %v649_v20 = vpack.c.bf16 %v373_v15, %v901_v2  ;;  %v751_v21 = vpop.permute.xlu0 %750  ;;  %v414_v24 = vpop.permute.xlu1 %413  ;;  %v568_v1 = vld [vmem:[%s1022_s3] sm:$0xff]  ;;  %s758_s3 = scalar_lea.vmem %s602_s11, 512 }
 0x1e7   :  { %v753_v22 = vunpack.i.h.bf16 %v751_v21  ;;  %v752_v23 = vunpack.i.l.bf16 %v751_v21  ;;  %vm402_vm3 = vcmp.lt.s32.totalorder %v394_v54, 16  ;;  %p759_p0 = scmp.ne.s32.totalorder %s602_s11, %s758_s3  ;;  %p764_p2 = scmp.lt.s32.totalorder %s758_s3, %s758_s3 }
 0x1e8   :  { %647 = vmatprep.subr.msk.bf16.mxu0 %vm957_vm13, %v646_v19  ;;  %661 = vmatprep.subr.msk.bf16.mxu1 %vm963_vm4, %v660_v17 }
 0x1e9   :  { %650 = vmatpush1.bf16.msk.msra.mxu0 %vm648_vm11, %v649_v20  ;;  %664 = vmatpush1.bf16.msk.msra.mxu1 %vm662_vm6, %v663_v18  ;;  %v419_v2 = vsel %vm417_vm5, %v753_v22, %v414_v24  ;;  %v418_v3 = vsel %vm417_vm5, %v752_v23, %v753_v22  ;;  %p765_p3 = por %p764_p2, %p763_p1 }
 0x1ea   :  { %v416_v4 = vpop.permute.xlu0 %415  ;;  %v435_v5 = vsel %vm402_vm3, %v419_v2, 0.0  ;;  %v434_v25 = vsel %vm401_vm7, %v418_v3, 0.0 }
 0x1eb   :  { %v420_v26 = vsel %vm417_vm5, %v414_v24, %v416_v4  ;;  %v425_v27 = vsel %vm417_vm5, %v416_v4, 0.0  ;;  %v448_v28 = vpack.c.bf16 %v435_v5, %v435_v5  ;;  %v447_v29 = vpack.c.bf16 %v434_v25, %v434_v25  ;;  %p766_p4 = pnand %p765_p3, %p759_p0 }
 0x1ec   :  { %v436_v30 = vsel %vm403_vm8, %v420_v26, 0.0  ;;  %v437_v31 = vsel %vm404_vm10, %v425_v27, 0.0 }
 0x1ed   :  { %v449_v32 = vpack.c.bf16 %v436_v30, %v436_v30  ;;  %v450_v33 = vpack.c.bf16 %v437_v31, %v437_v31  ;;  %651 = vmatprep.subr.msk.bf16.mxu0 %vm27_vm0, %v448_v28  ;;  %v455_v34 = vsel %vm27_vm0, %v447_v29, 0 }
 0x1ee   :  { %471 = vmatpush1.bf16.msra.mxu0 %v455_v34 }
 0x1ef   :  { %665 = vmatprep.subr.msk.bf16.mxu1 %vm27_vm0, %v450_v33  ;;  %v461_v36 = vsel %vm27_vm0, %v449_v32, 0 }
 0x1f0   :  { %512 = vmatpush1.bf16.msra.mxu1 %v461_v36 }
 0x1f1   :  { %652 = vmatmul.mubr.msk.bf16.vlgmr.msra.gmra.mrb[4].mxu0 %vm1042_vm9, %v438_v35 }
 0x1f3   :  { %666 = vmatmul.mubr.msk.bf16.vlgmr.msra.gmra.mrb[4].mxu1 %vm1043_vm14, %v438_v35 }
 0x2c4   :  { %v500_v37 = vpop.f32.mrb[4].mxu0 }
 0x2c5   :  { %v502_v38 = vpop.f32.mrb[5].mxu0 }
 0x2c6   :  { %v548_v39 = vadd.f32 %v502_v38, %v500_v37  ;;  %v504_v40 = vpop.f32.mrb[6].mxu0  ;;  %v541_v41 = vpop.f32.mrb[4].mxu1 }
 0x2c7   :  { %v505_v42 = vpop.f32.mrb[7].mxu0  ;;  %v543_v43 = vpop.f32.mrb[5].mxu1 }
 0x2c8   :  { %v549_v44 = vadd.f32 %v548_v39, %v541_v41  ;;  %v545_v45 = vpop.f32.mrb[6].mxu1 }
 0x2c9   :  { %v546_v46 = vpop.f32.mrb[7].mxu1 }
 0x2ca   :  { %v550_v47 = vadd.f32 %v549_v44, %v543_v43 }
 0x2cc   :  { %551 = vadd.xlane.f32.xlu1 %v550_v47 }
 0x2dd   :  { %584 = vperm.xlu1 %755, %v581_v61  }
 0x359   :  { %v552_v48 = vpop.xlane.xlu1 %551 }
 0x35a   :  { %v553_v49 = vmul.f32 0.001953125, %v552_v48 }
 0x35c   :  { %v554_v50 = vsub.f32 %v500_v37, %v553_v49  ;;  %v555_v51 = vsub.f32 %v502_v38, %v553_v49  ;;  %v556_v52 = vsub.f32 %v541_v41, %v553_v49  ;;  %v557_v53 = vsub.f32 %v543_v43, %v553_v49 }
 0x35d   :  { %v585_v9 = vpop.permute.xlu1 %584 }
 0x35e   :  { %v558_v54 = vmul.f32 %v554_v50, %v554_v50  ;;  %v559_v55 = vmul.f32 %v555_v51, %v555_v51  ;;  %v560_v56 = vmul.f32 %v556_v52, %v556_v52  ;;  %v561_v58 = vmul.f32 %v557_v53, %v557_v53 }
 0x360   :  { %v562_v57 = vadd.f32 %v559_v55, %v558_v54 }
 0x362   :  { %v563_v59 = vadd.f32 %v562_v57, %v560_v56 }
 0x364   :  { %v564_v60 = vadd.f32 %v563_v59, %v561_v58 }
 0x366   :  { %565 = vadd.xlane.f32.xlu0 %v564_v60 }
 0x3f3   :  { %v566_v62 = vpop.xlane.xlu0 %565 }
 0x3f4   :  { %v567_v63 = vmul.f32 0.001953125, %v566_v62 }
 0x3f6   :  { %v569_v0 = vadd.f32 1e-05, %v567_v63 }
 0x3f8   :  { %756 = vrsqrt.f32 %v569_v0 }
 0x402   :  { %v757_v6 = vpop.eup %756 }
 0x403   :  { %v571_v7 = vmul.f32 %v757_v6, %v568_v1 }
 0x405   :  { %574 = vperm.xlu0 %754, %v571_v7  }
 0x484   :  { %v575_v8 = vpop.permute.xlu0 %574 }
 0x485   :  { %v577_v10 = vmul.f32 %v575_v8, %v554_v50  ;;  %v578_v11 = vmul.f32 %v575_v8, %v555_v51  ;;  %v579_v12 = vmul.f32 %v575_v8, %v556_v52  ;;  %v580_v13 = vmul.f32 %v575_v8, %v557_v53 }
 0x487   :  { %v587_v14 = vadd.f32 %v585_v9, %v577_v10  ;;  %v588_v15 = vadd.f32 %v585_v9, %v578_v11  ;;  %v589_v16 = vadd.f32 %v585_v9, %v579_v12  ;;  %v590_v17 = vadd.f32 %v585_v9, %v580_v13 }
 0x489   :  { %591 = vst [vmem:[#allocation2] sm:$0xff] %v587_v14  ;;  %592 = vst [vmem:[#allocation2 + $0x8] sm:$0xff] %v588_v15 }
 0x48a   :  { %594 = vst [vmem:[#allocation2 + $0x10] sm:$0xff] %v589_v16  ;;  %595 = vst [vmem:[#allocation2 + $0x18] sm:$0xff] %v590_v17 }
 0x48b   :  { %769 = shalt.err (!%p766_p4)
}
 0x48c   :  { %s770_s13 = scalar_lea.hbm %s1024_s5, 512 }
 0x48d   :  { %p771_p5 = scmp.ne.s32.totalorder %s1024_s5, %s770_s13  ;;  %p774_p6 = scmp.lt.u32.totalorder %s770_s13, %s1024_s5 }
 0x48f   :  { %p776_p7 = pnand %p774_p6, %p771_p5 }
 0x491   :  { %779 = shalt.err (!%p776_p7)
}
 0x492   :  { %s793_s18 = smov 256  }
 0x493   :  { %607 = dma.vmem_to_hbm [thread:$0]  %s602_s11, 512, %s1024_s5, [#allocation3], %s793_s18, %s793_s18, %s783_s22  }
 0x494   :  { %780 = dma.done.wait [#allocation3], 512  }
 0x495   :  { %781 = vsyncadd [#allocation3], 4294966784 }
 0x496   :  { %611 = vsyncpa [#allocation3], 1 }

</bundles_post_ra>
